<compile_context>
chip_gen: v5e
topology: v5e:2x2
jax: 0.10.0
libtpu: 0.0.40
codegen_flags: <defaults>
</compile_context>

<pallas_src>
import functools

import jax
import jax.numpy as jnp
from jax import lax
from jax.experimental import pallas as pl
from jax.experimental.pallas import tpu as pltpu


def _crop_prompt_kernel(wy_ref, wxt_ref, x_ref, o_ref):
    # wy_ref : (1, crop, H)        bf16  per-batch row-interp weights
    # wxt_ref: (1, W, crop)        bf16  per-batch col-interp weights (pre-transposed)
    # x_ref  : (1, TILE_CT, H, W)  bf16
    # o_ref  : (1, TILE_CT, crop, crop)
    tct = x_ref.shape[1]
    H = x_ref.shape[2]
    W = x_ref.shape[3]
    crop = wy_ref.shape[1]

    wy = wy_ref[0]                                    # (crop, H)
    wxt = wxt_ref[0]                                  # (W, crop)
    xb = x_ref[0].reshape(tct * H, W)                 # (TILE_CT*H, W): large M for MXU

    # Column interpolation: one big MXU matmul, M = TILE_CT*H, K = W, N = crop.
    t1 = jnp.dot(xb, wxt, preferred_element_type=jnp.float32)      # (TILE_CT*H, crop) f32
    t1 = t1.reshape(tct, H, crop).astype(jnp.bfloat16)

    # Row interpolation: one big MXU matmul, (crop, H) contracted against
    # (TILE_CT, H, crop) over H  ==  (crop, H) @ (H, TILE_CT*crop).
    t2 = lax.dot_general(
        wy, t1,
        dimension_numbers=(((1,), (1,)), ((), ())),
        preferred_element_type=jnp.float32)                         # (crop, TILE_CT, crop)

    # Leading-dim transpose (lane dim unchanged) then store.
    o_ref[0] = jnp.transpose(t2, (1, 0, 2)).astype(o_ref.dtype)     # (TILE_CT, crop, crop)


def _bilinear_weight_matrix(in_size, crop_size, resize_b, offset_b):
    """Rows = cropped output pixels, cols = source pixels (PyTorch bilinear,
    align_corners=False).  Built scatter-free with broadcasted compares."""
    out_idx = offset_b + jnp.arange(crop_size, dtype=jnp.int32)      # index in resized image
    scale = jnp.float32(in_size) / resize_b.astype(jnp.float32)
    src = (out_idx.astype(jnp.float32) + 0.5) * scale - 0.5
    src = jnp.maximum(src, 0.0)                                      # PyTorch clamps negatives to 0
    i0f = jnp.floor(src)
    l1 = src - i0f
    l0 = 1.0 - l1
    i0 = jnp.clip(i0f.astype(jnp.int32), 0, in_size - 1)
    i1 = jnp.minimum(i0 + 1, in_size - 1)
    cols = jnp.arange(in_size, dtype=jnp.int32)[None, :]             # (1, in_size)
    w = (l0[:, None] * (cols == i0[:, None]).astype(jnp.float32)
         + l1[:, None] * (cols == i1[:, None]).astype(jnp.float32))
    # when i1 == i0 (edge), weights sum to 1 — matches torch
    return w                                                          # (crop, in_size) f32


def init_crop_prompter_params(key, crop_size):
    k1, k2, k3 = jax.random.split(key, 3)
    resize = jax.random.randint(k1, (3,), crop_size, 1024).astype(jnp.float32)
    y_offset = jax.random.randint(k2, (3,), 0, 32).astype(jnp.float32)
    x_offset = jax.random.randint(k3, (3,), 0, 32).astype(jnp.float32)
    return {"resize": resize, "y_offset": y_offset, "x_offset": x_offset}


_CAM_VIEW_DICT = {"Dashboard": 0, "Right_side_window": 1, "Rear_view": 2}


def _vmem_capacity_bytes():
    try:
        return int(pltpu.get_tpu_info().vmem_capacity_bytes)
    except Exception:
        return 64 * 1024 * 1024   # conservative (v7x per-TC)


def _working_set_bytes(tile_ct, H, W, crop):
    x_bytes = 2 * tile_ct * H * W * 2              # double-buffered bf16 input block
    w_bytes = 2 * (crop * H + W * crop) * 2        # double-buffered bf16 weight blocks
    out_bytes = 2 * tile_ct * crop * crop * 4      # double-buffered output block
    t1_bytes = tile_ct * H * crop * (4 + 2)        # f32 intermediate + bf16 copy
    t2_bytes = 2 * tile_ct * crop * crop * 4       # dot result + transposed copy
    return x_bytes + w_bytes + out_bytes + t1_bytes + t2_bytes


def _pick_tile_ct(CT, H, W, crop, budget_bytes):
    """Largest divisor of CT whose per-step working set fits the VMEM budget."""
    best = 1
    for tile in range(1, CT + 1):
        if CT % tile == 0 and _working_set_bytes(tile, H, W, crop) <= budget_bytes:
            best = tile
    return best


def crop_prompter_forward(params, x, cam_views, crop_size):
    """x: (B, C, T, H, W). Returns [prompt] with prompt (B, C, T, crop, crop)."""
    B, C, T, H, W = x.shape
    assert H == W, f"input x does not have matching height/width; got ({H}, {W})"
    assert H >= crop_size, "input x H/W smaller than desired crop size"
    assert B == len(cam_views), f"len(cam_views) != batch size ({B} vs {len(cam_views)})"

    cam_idx = jnp.array([_CAM_VIEW_DICT[v] for v in cam_views], dtype=jnp.int32)

    clamped_resize = jnp.clip(params["resize"], H, 1024).astype(jnp.int32)
    max_off = (clamped_resize - crop_size).astype(jnp.float32)
    clamped_y = jnp.clip(params["y_offset"], 0.0, max_off).astype(jnp.int32)
    clamped_x = jnp.clip(params["x_offset"], 0.0, max_off).astype(jnp.int32)

    R = clamped_resize[cam_idx]   # (B,)
    yo = clamped_y[cam_idx]       # (B,)
    xo = clamped_x[cam_idx]       # (B,)

    # Per-batch separable bilinear weights (glue, plain JAX).
    wy = jax.vmap(functools.partial(_bilinear_weight_matrix, H, crop_size))(R, yo)   # (B, crop, H)
    wx = jax.vmap(functools.partial(_bilinear_weight_matrix, W, crop_size))(R, xo)   # (B, crop, W)

    # bf16 data path (accumulation stays f32 inside the kernel via MXU).
    wy_bf = wy.astype(jnp.bfloat16)                                  # (B, crop, H)
    wxt_bf = jnp.transpose(wx, (0, 2, 1)).astype(jnp.bfloat16)       # (B, W, crop) pre-transposed
    CT = C * T
    x_flat = x.reshape(B, CT, H, W).astype(jnp.bfloat16)

    # Generation-aware tiling of the CT axis.
    vmem_cap = _vmem_capacity_bytes()
    budget = int(0.7 * vmem_cap)                       # ~45 MiB on v7x, ~90 MiB on v5e/v6e
    tile_ct = _pick_tile_ct(CT, H, W, crop_size, budget)
    n_ct = CT // tile_ct
    vmem_limit = int(min(vmem_cap - (4 << 20),
                         max(32 << 20, _working_set_bytes(tile_ct, H, W, crop_size) + (8 << 20))))

    out = pl.pallas_call(
        _crop_prompt_kernel,
        out_shape=jax.ShapeDtypeStruct((B, CT, crop_size, crop_size), x.dtype),
        grid=(B, n_ct),
        in_specs=[
            # weight blocks independent of the inner CT axis -> not re-DMA'd per inner step
            pl.BlockSpec((1, crop_size, H), lambda b, ct: (b, 0, 0)),
            pl.BlockSpec((1, W, crop_size), lambda b, ct: (b, 0, 0)),
            pl.BlockSpec((1, tile_ct, H, W), lambda b, ct: (b, ct, 0, 0)),
        ],
        out_specs=pl.BlockSpec((1, tile_ct, crop_size, crop_size), lambda b, ct: (b, ct, 0, 0)),
        compiler_params=pltpu.CompilerParams(
            dimension_semantics=("parallel", "parallel"),
            vmem_limit_bytes=vmem_limit),
    )(wy_bf, wxt_bf, x_flat)

    prompt = out.reshape(B, C, T, crop_size, crop_size)
    return [prompt]


if __name__ == "__main__":
    key = jax.random.PRNGKey(0)
    kx, kp = jax.random.split(key)

    # Small shapes consistent with the module: video clips (B, C, T, H, W).
    B, C, T, H, W = 2, 3, 4, 16, 16
    crop_size = 8  # args.image_size

    x = jax.random.normal(kx, (B, C, T, H, W), dtype=jnp.float32)
    cam_views = ["Dashboard", "Rear_view"]

    params = init_crop_prompter_params(kp, crop_size)

    (prompt,) = crop_prompter_forward(params, x, cam_views, crop_size)
    prompt = jax.block_until_ready(prompt)
    assert prompt.shape == (B, C, T, crop_size, crop_size), prompt.shape

    # Pure-JAX f32 reference (same separable-matmul math, no Pallas / no bf16).
    cam_idx = jnp.array([_CAM_VIEW_DICT[v] for v in cam_views], dtype=jnp.int32)
    cr = jnp.clip(params["resize"], H, 1024).astype(jnp.int32)
    mo = (cr - crop_size).astype(jnp.float32)
    cy = jnp.clip(params["y_offset"], 0.0, mo).astype(jnp.int32)[cam_idx]
    cx = jnp.clip(params["x_offset"], 0.0, mo).astype(jnp.int32)[cam_idx]
    Rb = cr[cam_idx]
    wy_ref = jax.vmap(functools.partial(_bilinear_weight_matrix, H, crop_size))(Rb, cy)
    wx_ref = jax.vmap(functools.partial(_bilinear_weight_matrix, W, crop_size))(Rb, cx)
    ref = jnp.einsum("bph,bcthw,bqw->bctpq", wy_ref, x, wx_ref)
    # bf16 data path inside the kernel -> loosened tolerance vs the pure-f32 reference.
    max_err = float(jnp.max(jnp.abs(prompt - ref)))
    assert jnp.allclose(prompt, ref, atol=5e-2, rtol=5e-2), max_err

    print("KERNEL_OK")
</pallas_src>

<mosaic_0001>
module attributes {stable_mosaic.version = 11 : i64} {
  func.func @_crop_prompt_kernel(%arg0: i32, %arg1: i32, %arg2: memref<1x8x16xbf16, #tpu.memory_space<vmem>>, %arg3: memref<1x16x8xbf16, #tpu.memory_space<vmem>>, %arg4: memref<1x12x16x16xbf16, #tpu.memory_space<vmem>>, %arg5: memref<1x12x8x8xf32, #tpu.memory_space<vmem>>) attributes {dimension_semantics = [#tpu.dimension_semantics<parallel>, #tpu.dimension_semantics<parallel>], iteration_bounds = array<i64: 2, 1>, scalar_prefetch = 0 : i64, scratch_operands = 0 : i64, tpu.core_type = #tpu.core_type<tc>, window_params = [{transform_indices = @transform_0, window_bounds = array<i64: 1, 8, 16>}, {transform_indices = @transform_1, window_bounds = array<i64: 1, 16, 8>}, {transform_indices = @transform_2, window_bounds = array<i64: 1, 12, 16, 16>}, {transform_indices = @transform_3, window_bounds = array<i64: 1, 12, 8, 8>}]} {
    %c0 = arith.constant 0 : index
    %c0_0 = arith.constant 0 : index
    %c0_1 = arith.constant 0 : index
    %0 = vector.load %arg2[%c0, %c0_0, %c0_1] : memref<1x8x16xbf16, #tpu.memory_space<vmem>>, vector<1x8x16xbf16>
    %1 = vector.shape_cast %0 : vector<1x8x16xbf16> to vector<8x16xbf16>
    %c0_2 = arith.constant 0 : index
    %c0_3 = arith.constant 0 : index
    %c0_4 = arith.constant 0 : index
    %2 = vector.load %arg3[%c0_2, %c0_3, %c0_4] : memref<1x16x8xbf16, #tpu.memory_space<vmem>>, vector<1x16x8xbf16>
    %3 = vector.shape_cast %2 : vector<1x16x8xbf16> to vector<16x8xbf16>
    %c0_5 = arith.constant 0 : index
    %c0_6 = arith.constant 0 : index
    %c0_7 = arith.constant 0 : index
    %c0_8 = arith.constant 0 : index
    %4 = vector.load %arg4[%c0_5, %c0_6, %c0_7, %c0_8] : memref<1x12x16x16xbf16, #tpu.memory_space<vmem>>, vector<1x12x16x16xbf16>
    %5 = vector.shape_cast %4 : vector<1x12x16x16xbf16> to vector<12x16x16xbf16>
    %6 = vector.shape_cast %5 : vector<12x16x16xbf16> to vector<192x16xbf16>
    %cst = arith.constant dense<0.000000e+00> : vector<192x8xf32>
    %7 = tpu.matmul %6, %3, %cst {dimension_numbers = #tpu.dot_dimension_numbers<[1], [0], [0], [1], [0, 0, 1, 1], [], []>} : vector<192x16xbf16>, vector<16x8xbf16>, vector<192x8xf32> -> vector<192x8xf32>
    %8 = vector.shape_cast %7 : vector<192x8xf32> to vector<12x16x8xf32>
    %9 = arith.truncf %8 : vector<12x16x8xf32> to vector<12x16x8xbf16>
    %cst_9 = arith.constant dense<0.000000e+00> : vector<8x12x8xf32>
    %10 = tpu.matmul %1, %9, %cst_9 {dimension_numbers = #tpu.dot_dimension_numbers<[1], [1], [0], [0, 2], [0, 0, 1, 0, 1, 2], [], []>} : vector<8x16xbf16>, vector<12x16x8xbf16>, vector<8x12x8xf32> -> vector<8x12x8xf32>
    %11 = tpu.transpose %10, [1, 0, 2] : vector<8x12x8xf32> -> vector<12x8x8xf32>
    %c0_10 = arith.constant 0 : index
    %c0_11 = arith.constant 0 : index
    %c0_12 = arith.constant 0 : index
    %c0_13 = arith.constant 0 : index
    %12 = vector.load %arg5[%c0_10, %c0_11, %c0_12, %c0_13] : memref<1x12x8x8xf32, #tpu.memory_space<vmem>>, vector<1x12x8x8xf32>
    %13 = vector.shape_cast %12 : vector<1x12x8x8xf32> to vector<12x8x8xf32>
    %14 = vector.shape_cast %11 : vector<12x8x8xf32> to vector<1x12x8x8xf32>
    tpu.vector_store %arg5[%c0_10, %c0_11, %c0_12, %c0_13], %14 {strides = array<i32>} : memref<1x12x8x8xf32, #tpu.memory_space<vmem>>, vector<1x12x8x8xf32>,
    return
  }
  func.func @transform_0(%arg0: i32, %arg1: i32) -> (i32, i32, i32) {
    %c0_i32 = arith.constant 0 : i32
    %c0_i32_0 = arith.constant 0 : i32
    %c0_i32_1 = arith.constant 0 : i32
    return %arg0, %c0_i32, %c0_i32_0 : i32, i32, i32
  }
  func.func @transform_1(%arg0: i32, %arg1: i32) -> (i32, i32, i32) {
    %c0_i32 = arith.constant 0 : i32
    %c0_i32_0 = arith.constant 0 : i32
    %c0_i32_1 = arith.constant 0 : i32
    return %arg0, %c0_i32, %c0_i32_0 : i32, i32, i32
  }
  func.func @transform_2(%arg0: i32, %arg1: i32) -> (i32, i32, i32, i32) {
    %c0_i32 = arith.constant 0 : i32
    %c0_i32_0 = arith.constant 0 : i32
    %c0_i32_1 = arith.constant 0 : i32
    return %arg0, %arg1, %c0_i32, %c0_i32_0 : i32, i32, i32, i32
  }
  func.func @transform_3(%arg0: i32, %arg1: i32) -> (i32, i32, i32, i32) {
    %c0_i32 = arith.constant 0 : i32
    %c0_i32_0 = arith.constant 0 : i32
    %c0_i32_1 = arith.constant 0 : i32
    return %arg0, %arg1, %c0_i32, %c0_i32_0 : i32, i32, i32, i32
  }
}

</mosaic_0001>

<bundles_post_ra>
// kernel: tpu_custom_call.1
= control target key start
LH: loop header
LB: loop body
LE: loop exit
PB: predicated region body
PF: predicated region fallthrough
CT: control target
= control target key end

     0   :  { %8 = vsyncpa [#allocation3], 0  ;;  %s2637_s0 = inlined_call_operand.vmem [shape: bf16[2,8,16], index: 0, kind: input, shape index: {}]   ;;  %s2638_s1 = inlined_call_operand.vmem [shape: bf16[2,16,8], index: 1, kind: input, shape index: {}]   ;;  %s2639_s2 = inlined_call_operand.hbm [shape: bf16[2,12,16,16], index: 2, kind: input, shape index: {}]   ;;  %s2640_s3 = inlined_call_operand.vmem [shape: f32[2,12,8,8], index: 3, kind: output, shape index: {}]  }
   0x1   :  { %10 = vsyncpa [#allocation3 + $0x1], 0  ;;  %s2017_s12 = smov 0   ;;  %s2019_s13 = smov 0  }
   0x2   :  { %s2021_s14 = smov 0   ;;  %s2023_s15 = smov 0  }
   0x3   :  { %s2025_s16 = smov 0   ;;  %s2027_s17 = smov 0  }
   0x4 LB: > { %s1723_s18 = sadd.s32 4294967295, %s1975_s17   ;;  %s28_s19 = sadd.s32 1, %s1971_s16  ;;  %s1975_s17 = sphi %s2027_s17, %s16_s17   ;;  %s1971_s16 = sphi %s2025_s16, %s2646_s16   ;;  %s1967_s15 = sphi %s2023_s15, %s2645_s15   ;;  %s1963_s14 = sphi %s2021_s14, %s2644_s14   ;;  %s1959_s13 = sphi %s2019_s13, %s2643_s13   ;;  %s1955_s12 = sphi %s2017_s12, %s2642_s12  }
   0x5   : > { %p30_p0 = scmp.ge.s32.totalorder %s28_s19, 2  ;;  %s89_s20 = sadd.s32 1, %s1963_s14 }
   0x6   : > { %p96_p1 = scmp.ne.s32.totalorder %s1963_s14, %s1959_s13  ;;  %p97_p2 = scmp.eq.s32.totalorder %s1975_s17, 0 }
   0x7   : > { %s2648_s19 = smov (%p30_p0, %s28_s19), 0  ;;  %p102_p4 = scmp.ne.s32.totalorder %s1959_s13, %s1955_s12 }
   0x8   : > { %p98_p3 = por %p97_p2, %p96_p1  ;;  %s84_s21 = ssub.s32 %s1971_s16, %s2648_s19 }
   0x9   : > { %p103_p5 = scmp.eq.s32.totalorder %s1723_s18, 0  ;;  %p87_p6 = scmp.eq.s32.totalorder %s84_s21, 0 }
   0xa   : > { %p1826_p8 = scmp.lt.s32.totalorder %s1975_s17, 2  ;;  %s169_s24 = sand.u32 1, %s1963_s14  }
   0xb   : > { %p2056_p7 = por %p103_p5, %p102_p4  ;;  %s1817_s25 = smul.u32 96, %s1971_s16 }
   0xc   : > { %s2062_s23 = scalar_select %p87_p6, %s1963_s14, %s89_s20  }
   0xd   : > { %s1816_s26 = smul.u32 96, %s169_s24  ;;  %s181_s29 = scalar_lea.hbm %s2639_s2, %s1817_s25 }
   0xe   : > { %p1823_p9 = pnand %p1826_p8, %p98_p3  ;;  %s182_s30 = sshll.u32 %s181_s29, 4  ;;  %s183_s30 = int_to_ptr.hbm [resolvable:$true] %s182_s30 }
   0xf   : > { %s173_s4 = scalar_lea.vmem [#allocation2], %s1816_s26  ;;  %s170_s6 = scalar_lea.sflag [#allocation3], %s169_s24 }
  0x10   : > { %s184_s5 = sshll.u32 %s173_s4, 4  ;;  %s1977_s7 = smov 64   ;;  %s185_s5 = int_to_ptr.vmem [resolvable:$true] %s184_s5 }
  0x11   : > { %s1978_s8 = smov 4   ;;  %p1728_p10 = scmp.ge.s32.totalorder %s1975_s17, 1 }
  0x12   : > { %1825 = dma.hbm_to_vmem [thread:$0]  (!%p1823_p9), %s183_s30, 1536, %s185_s5, %s170_s6, %s1977_s7, %s1977_s7, %s1978_s8  }
  0x13   : > { %p192_p11 = scmp.lt.s32.totalorder %s1975_s17, 3 }
  0x15   : > { %p193_p12 = pnand %p1728_p10, %p192_p11 }
  0x16   : > { %s198_s9 = sand.u32 (!%p193_p12), 1, %s1959_s13  }
  0x17   : > { %196 = sbr.rel (%p193_p12) target bundleno = 735 (0x2df), region = 32  ;;  %s199_s11 = scalar_lea.sflag (!%p193_p12), [#allocation3], %s198_s9 }
  0x18   : > { %s1818_s10 = smul.u32 (!%p193_p12), 96, %s198_s9 }
  0x1a   : > { %s2072_s12 = scalar_lea.vmem (!%p193_p12), [#allocation2], %s1818_s10 }
  0x1c   : > { %1950 = dma.done.wait (%p2056_p7), %s199_s11, 1536  }
  0x1d   : > { %1952 = vsyncadd (%p2056_p7), %s199_s11, 4294965760  ;;  %p239_p13 = scmp.lt.s32.totalorder %s1967_s15, 1  ;;  %v1802_v1 = vld [vmem:[%s2072_s12] sm:$0xff]  ;;  %vm353_vm0 = vcmask 130048   ;;  %v1803_v4 = vld [vmem:[%s2072_s12 + $0x8] sm:$0xff]  ;;  %vm572_vm1 = vcmask 1047556  }
  0x1e   : > { %v1806_v2 = vld [vmem:[%s2072_s12 + $0x20] sm:$0xff]  ;;  %v1807_v5 = vld [vmem:[%s2072_s12 + $0x28] sm:$0xff]  ;;  %v1804_v7 = vld [vmem:[%s2072_s12 + $0x10] sm:$0xff]  ;;  %v1979_v32 = vmov 1983009808   ;;  %s1981_s22 = smov 64  }
  0x1f   : > { %s2650_s15 = smov (!%p239_p13, %s1967_s15), 1  ;;  %v1810_v3 = vld [vmem:[%s2072_s12 + $0x40] sm:$0xff]  ;;  %v1811_v6 = vld [vmem:[%s2072_s12 + $0x48] sm:$0xff]  ;;  %v1808_v8 = vld [vmem:[%s2072_s12 + $0x30] sm:$0xff]  ;;  %v575_v33 = vunpack.c.l.s4 %v1979_v32  ;;  %s1982_s25 = smov 40   ;;  %vm1102_vm2 = vcmask 64512  }
  0x20   : > { %s1800_s18 = sshll.u32 %s2650_s15, 3  ;;  %v1812_v9 = vld [vmem:[%s2072_s12 + $0x50] sm:$0xff]  ;;  %v1805_v10 = vld [vmem:[%s2072_s12 + $0x18] sm:$0xff]  ;;  %s1983_s26 = smov 32   ;;  %vm1108_vm3 = vcmask 195584   ;;  %vm1111_vm4 = vcmask 261120  }
  0x21   : > { %s247_s24 = scalar_lea.vmem %s2638_s1, %s1800_s18  ;;  %v1809_v11 = vld [vmem:[%s2072_s12 + $0x38] sm:$0xff]  ;;  %v2110_v45 = vunpack.c.0.s8 %v575_v33  ;;  %s1984_s27 = smov 8   ;;  %vm1114_vm5 = vcmask 326656   ;;  %vm1117_vm6 = vcmask 392192   ;;  %vm1120_vm7 = vcmask 457728  }
  0x22   : > { %v1801_v0 = vld [vmem:[%s247_s24] sm:$0xff]  ;;  %v1813_v12 = vld [vmem:[%s2072_s12 + $0x58] sm:$0xff]  ;;  %s1985_s28 = smov 48   ;;  %s1986_s29 = smov 16   ;;  %vm1123_vm8 = vcmask 523264   ;;  %vm1126_vm9 = vcmask 588800  }
  0x23   : > { %397 = vmatpush.bf16.msra.mxu0 %v1801_v0  ;;  %1814 = vmatpush.bf16.msra.mxu2 %v1801_v0  ;;  %s1987_s30 = smov 24   ;;  %s1988_s4 = smov 72   ;;  %vm1129_vm10 = vcmask 654336   ;;  %vm1132_vm11 = vcmask 719872  }
  0x24   : > { %1815 = vmatpush.bf16.msra.mxu3 %v1801_v0  ;;  %s1989_s5 = smov 56   ;;  %s1990_s6 = smov 88  }
  0x25   : > { %s1991_s7 = smov 80   ;;  %s1729_s8 = sshll.u32 %s2650_s15, 2 }
  0x26   : > { %1785 = vmatmul.msk.bf16.vlgmr.msra.gmra.mxu0 %vm353_vm0, %v1802_v1  ;;  %1789 = vmatmul.msk.bf16.vlgmr.msra.gmra.mxu2 %vm353_vm0, %v1806_v2  ;;  %s242_s11 = scalar_lea.vmem %s2637_s0, %s1729_s8  ;;  %s1993_s12 = smov 104  }
  0x27   : > { %1793 = vmatmul.msk.bf16.vlgmr.msra.gmra.mxu3 %vm353_vm0, %v1810_v3  ;;  %s1994_s18 = smov 112   ;;  %s1995_s20 = smov 120  }
  0x28   : > { %s1996_s21 = smov 96   ;;  %s1819_s24 = smul.u32 96, %s2650_s15 }
  0x36   : > { %1786 = vmatmul.msk.bf16.gmra.mxu0 %vm353_vm0, %v1803_v4  ;;  %1790 = vmatmul.msk.bf16.gmra.mxu2 %vm353_vm0, %v1807_v5 }
  0x37   : > { %1794 = vmatmul.msk.bf16.gmra.mxu3 %vm353_vm0, %v1811_v6 }
  0x46   : > { %1787 = vmatmul.msk.bf16.gmra.mxu0 %vm353_vm0, %v1804_v7  ;;  %1791 = vmatmul.msk.bf16.gmra.mxu2 %vm353_vm0, %v1808_v8 }
  0x47   : > { %1795 = vmatmul.msk.bf16.gmra.mxu3 %vm353_vm0, %v1812_v9 }
  0x56   : > { %1788 = vmatmul.msk.bf16.gmra.mxu0 %vm353_vm0, %v1805_v10  ;;  %1792 = vmatmul.msk.bf16.gmra.mxu2 %vm353_vm0, %v1809_v11 }
  0x57   : > { %1796 = vmatmul.msk.bf16.gmra.mxu3 %vm353_vm0, %v1813_v12 }
  0xa3   : > { %v399_v13 = vpop.f32.mrf.mxu0 }
  0xa4   : > { %v459_v36 = vpack.c.bf16 %v399_v13, %v399_v13 }
  0xa6   : > { %v487_v52 = vshrl.u32 %v459_v36, 16 }
  0xa9   : > { %v419_v14 = vpop.f32.mrf.mxu2 }
  0xaa   : > { %v439_v15 = vpop.f32.mrf.mxu3  ;;  %v467_v26 = vpack.c.bf16 %v419_v14, %v419_v14  ;;  %v1980_v14 = vmov 1934713408  }
  0xab   : > { %v401_v16 = vpop.f32.mrf.mxu0  ;;  %v475_v40 = vpack.c.bf16 %v439_v15, %v439_v15  ;;  %v589_v15 = vunpack.c.l.s4 %v1980_v14 }
  0xac   : > { %v503_v30 = vshrl.u32 %v467_v26, 16  ;;  %v460_v56 = vpack.c.bf16 %v401_v16, %v401_v16 }
  0xad   : > { %v518_v55 = vshrl.u32 %v475_v40, 16 }
  0xae   : > { %v531_v7 = vshrl.u32 %v460_v56, 16 }
  0xb1   : > { %v421_v17 = vpop.f32.mrf.mxu2 }
  0xb2   : > { %v441_v18 = vpop.f32.mrf.mxu3  ;;  %v468_v34 = vpack.c.bf16 %v421_v17, %v421_v17 }
  0xb3   : > { %v404_v19 = vpop.f32.mrf.mxu0  ;;  %v476_v49 = vpack.c.bf16 %v441_v18, %v441_v18 }
  0xb4   : > { %v461_v31 = vpack.c.bf16 %v404_v19, %v404_v19  ;;  %v547_v48 = vshrl.u32 %v468_v34, 16 }
  0xb5   : > { %v562_v63 = vshrl.u32 %v476_v49, 16 }
  0xb6   : > { %v488_v44 = vshrl.u32 %v461_v31, 16  ;;  %v485_v59 = vpack.i.b16 %v461_v31, %v459_v36 }
  0xb8   : > { %v489_v60 = vpack.i.b16 %v488_v44, %v487_v52 }
  0xb9   : > { %v424_v20 = vpop.f32.mrf.mxu2 }
  0xba   : > { %v444_v21 = vpop.f32.mrf.mxu3  ;;  %v469_v23 = vpack.c.bf16 %v424_v20, %v424_v20 }
  0xbb   : > { %v406_v22 = vpop.f32.mrf.mxu0  ;;  %v477_v35 = vpack.c.bf16 %v444_v21, %v444_v21 }
  0xbc   : > { %v504_v28 = vshrl.u32 %v469_v23, 16  ;;  %v501_v37 = vpack.i.b16 %v469_v23, %v467_v26  ;;  %v462_v51 = vpack.c.bf16 %v406_v22, %v406_v22 }
  0xbd   : > { %v519_v50 = vshrl.u32 %v477_v35, 16  ;;  %v517_v61 = vpack.i.b16 %v477_v35, %v475_v40 }
  0xbe   : > { %v505_v38 = vpack.i.b16 %v504_v28, %v503_v30  ;;  %v571_v53 = vrot.slane %v501_v37, 4  ;;  %v532_v1 = vshrl.u32 %v462_v51, 16  ;;  %v529_v4 = vpack.i.b16 %v462_v51, %v460_v56 }
  0xbf   : > { %v520_v0 = vpack.i.b16 %v519_v50, %v518_v55  ;;  %v2115_v11 = vperm.slane %v517_v61, %v2110_v45  ;;  %v2138_v28 = vunpack.c.0.s8 %v589_v15 }
  0xc0   : > { %v600_v54 = vrot.slane %v505_v38, 4  ;;  %v573_v2 = vsel %vm572_vm1, %v571_v53, %v485_v59  ;;  %v533_v19 = vpack.i.b16 %v532_v1, %v531_v7 }
  0xc1   : > { %v426_v24 = vpop.f32.mrf.mxu2  ;;  %v2119_v16 = vperm.slane %v573_v2, %v2110_v45  ;;  %v2125_v18 = vperm.slane %v520_v0, %v2110_v45 }
  0xc2   : > { %v446_v25 = vpop.f32.mrf.mxu3  ;;  %v470_v29 = vpack.c.bf16 %v426_v24, %v426_v24  ;;  %v601_v3 = vsel %vm572_vm1, %v600_v54, %v489_v60 }
  0xc3   : > { %v409_v27 = vpop.f32.mrf.mxu0  ;;  %v478_v42 = vpack.c.bf16 %v446_v25, %v446_v25  ;;  %v2122_v17 = vperm.slane %v601_v3, %v2110_v45  ;;  %v640_v25 = vrot.slane %v2115_v11, 4  ;;  %v666_v31 = vrot.slane %v2125_v18, 4 }
  0xc4   : > { %v548_v41 = vshrl.u32 %v470_v29, 16  ;;  %v545_v46 = vpack.i.b16 %v470_v29, %v468_v34  ;;  %v463_v21 = vpack.c.bf16 %v409_v27, %v409_v27  ;;  %v586_v29 = vrot.slane %v2119_v16, 4 }
  0xc5   : > { %v563_v58 = vshrl.u32 %v478_v42, 16  ;;  %v561_v5 = vpack.i.b16 %v478_v42, %v476_v49  ;;  %v614_v30 = vrot.slane %v2122_v17, 4 }
  0xc6   : > { %v549_v57 = vpack.i.b16 %v548_v41, %v547_v48  ;;  %v680_v62 = vrot.slane %v545_v46, 4  ;;  %v495_v34 = vshrl.u32 %v463_v21, 16 }
  0xc7   : > { %v564_v9 = vpack.i.b16 %v563_v58, %v562_v63  ;;  %v2128_v20 = vperm.slane %v561_v5, %v2110_v45 }
  0xc8   : > { %v708_v8 = vrot.slane %v549_v57, 4  ;;  %v681_v12 = vsel %vm572_vm1, %v680_v62, %v529_v4 }
  0xc9   : > { %v429_v39 = vpop.f32.mrf.mxu2  ;;  %v2131_v22 = vperm.slane %v681_v12, %v2110_v45  ;;  %v2135_v24 = vperm.slane %v564_v9, %v2110_v45  ;;  %v748_v33 = vrot.slane %v2128_v20, 4 }
  0xca   : > { %v449_v43 = vpop.f32.mrf.mxu3  ;;  %v709_v23 = vsel %vm572_vm1, %v708_v8, %v533_v19  ;;  %v471_v26 = vpack.c.bf16 %v429_v39, %v429_v39 }
  0xcb   : > { %v411_v47 = vpop.f32.mrf.mxu0  ;;  %v2144_v32 = vperm.slane %v709_v23, %v2110_v45  ;;  %v479_v35 = vpack.c.bf16 %v449_v43, %v449_v43  ;;  %v694_v37 = vrot.slane %v2131_v22, 4  ;;  %v774_v38 = vrot.slane %v2135_v24, 4 }
  0xcc   : > { %v2149_v39 = vpack.c.bf16 %v411_v47, %v411_v47  ;;  %v511_v42 = vshrl.u32 %v471_v26, 16 }
  0xcd   : > { %v722_v53 = vrot.slane %v2144_v32, 4  ;;  %v524_v54 = vshrl.u32 %v479_v35, 16 }
  0xce   : > { %v539_v56 = vshrl.u32 %v2149_v39, 16 }
  0xd1   : > { %v431_v6 = vpop.f32.mrf.mxu2 }
  0xd2   : > { %v451_v10 = vpop.f32.mrf.mxu3  ;;  %v2151_v44 = vpack.c.bf16 %v431_v6, %v431_v6 }
  0xd3   : > { %v414_v13 = vpop.f32.mrf.mxu0  ;;  %v2153_v46 = vpack.c.bf16 %v451_v10, %v451_v10 }
  0xd4   : > { %v465_v27 = vpack.c.bf16 %v414_v13, %v414_v13  ;;  %v555_v60 = vshrl.u32 %v2151_v44, 16 }
  0xd5   : > { %v568_v61 = vshrl.u32 %v2153_v46, 16 }
  0xd6   : > { %v496_v50 = vshrl.u32 %v465_v27, 16  ;;  %v493_v57 = vpack.i.b16 %v465_v27, %v463_v21 }
  0xd8   : > { %v497_v0 = vpack.i.b16 %v496_v50, %v495_v34 }
  0xd9   : > { %v434_v36 = vpop.f32.mrf.mxu2 }
  0xda   : > { %v473_v40 = vpack.c.bf16 %v434_v36, %v434_v36  ;;  %v454_v41 = vpop.f32.mrf.mxu3 }
  0xdb   : > { %v481_v48 = vpack.c.bf16 %v454_v41, %v454_v41  ;;  %v416_v49 = vpop.f32.mrf.mxu0 }
  0xdc   : > { %v509_v51 = vpack.i.b16 %v473_v40, %v471_v26  ;;  %v512_v52 = vshrl.u32 %v473_v40, 16  ;;  %v2155_v43 = vpack.c.bf16 %v416_v49, %v416_v49 }
  0xdd   : > { %v523_v55 = vpack.i.b16 %v481_v48, %v479_v35  ;;  %v525_v47 = vshrl.u32 %v481_v48, 16 }
  0xde   : > { %v513_v58 = vpack.i.b16 %v512_v52, %v511_v42  ;;  %v578_v59 = vrot.slane %v509_v51, 4  ;;  %v537_v3 = vpack.i.b16 %v2155_v43, %v2149_v39  ;;  %v540_v12 = vshrl.u32 %v2155_v43, 16 }
  0xdf   : > { %v526_v62 = vpack.i.b16 %v525_v47, %v524_v54  ;;  %v637_v63 = vperm.slane %v523_v55, %v2110_v45 }
  0xe0   : > { %v579_v1 = vsel %vm572_vm1, %v578_v59, %v493_v57  ;;  %v606_v2 = vrot.slane %v513_v58, 4  ;;  %v541_v51 = vpack.i.b16 %v540_v12, %v539_v56 }
  0xe1   : > { %v583_v4 = vperm.slane %v579_v1, %v2110_v45  ;;  %v638_v5 = vrot.slane %v637_v63, 4  ;;  %v641_v6 = vsel %vm572_vm1, %v637_v63, %v640_v25  ;;  %v663_v7 = vperm.slane %v526_v62, %v2110_v45  ;;  %v436_v8 = vpop.f32.mrf.mxu2 }
  0xe2   : > { %v607_v9 = vsel %vm572_vm1, %v606_v2, %v497_v0  ;;  %v649_v10 = vperm.slane %v641_v6, %v2138_v28  ;;  %v474_v13 = vpack.c.bf16 %v436_v8, %v436_v8 }
  0xe3   : > { %v584_v14 = vrot.slane %v583_v4, 4  ;;  %v587_v15 = vsel %vm572_vm1, %v583_v4, %v586_v29  ;;  %v611_v19 = vperm.slane %v607_v9, %v2110_v45  ;;  %v639_v21 = vsel %vm572_vm1, %v638_v5, %v2115_v11 }
  0xe4   : > { %v595_v23 = vperm.slane %v587_v15, %v2138_v28  ;;  %v645_v25 = vperm.slane %v639_v21, %v2138_v28  ;;  %v652_v26 = vrot.slane %v649_v10, 4  ;;  %v664_v27 = vrot.slane %v663_v7, 4 }
  0xe5   : > { %v585_v34 = vsel %vm572_vm1, %v584_v14, %v2119_v16  ;;  %v612_v35 = vrot.slane %v611_v19, 4  ;;  %v615_v36 = vsel %vm572_vm1, %v611_v19, %v614_v30  ;;  %v667_v39 = vsel %vm572_vm1, %v663_v7, %v666_v31 }
  0xe6   : > { %v2182_v29 = vperm.slane %v585_v34, %v2138_v28  ;;  %v2184_v40 = vrot.slane %v595_v23, 4  ;;  %v623_v11 = vperm.slane %v615_v36, %v2138_v28  ;;  %v650_v41 = vrot.slane %v645_v25, 4 }
  0xe7   : > { %v613_v42 = vsel %vm572_vm1, %v612_v35, %v2122_v17  ;;  %v653_v48 = vsel %vm572_vm1, 0, %v652_v26  ;;  %v665_v16 = vsel %vm572_vm1, %v664_v27, %v2125_v18  ;;  %v675_v30 = vperm.slane %v667_v39, %v2138_v28  ;;  %v456_v18 = vpop.f32.mrf.mxu3 }
  0xe8   : > { %v2195_v31 = vsel %vm572_vm1, 0, %v2184_v40  ;;  %v2198_v49 = vperm.slane %v613_v42, %v2138_v28  ;;  %v2200_v50 = vrot.slane %v623_v11, 4  ;;  %v596_v52 = vrot.slane %v2182_v29, 4 }
  0xe9   : > { %v793_v17 = vrot.slane %v2195_v31, 4  ;;  %v671_v43 = vperm.slane %v665_v16, %v2138_v28  ;;  %v678_v54 = vrot.slane %v675_v30, 4  ;;  %v651_v47 = vsel %vm572_vm1, 0, %v650_v41 }
  0xea   : > { %v2207_v55 = vsel %vm572_vm1, 0, %v2200_v50  ;;  %v901_v57 = vrot.slane %v653_v48, 4  ;;  %v553_v58 = vpack.i.b16 %v474_v13, %v2151_v44  ;;  %v624_v59 = vrot.slane %v2198_v49, 4 }
  0xeb   : > { %v676_v56 = vrot.slane %v671_v43, 4  ;;  %v679_v62 = vsel %vm572_vm1, 0, %v678_v54  ;;  %v556_v63 = vshrl.u32 %v474_v13, 16  ;;  %v482_v2 = vpack.c.bf16 %v456_v18, %v456_v18 }
  0xec   : > { %v920_v0 = vrot.slane %v679_v62, 4  ;;  %v686_v1 = vrot.slane %v553_v58, 4  ;;  %v896_v4 = vsel %vm572_vm1, %v652_v26, %v645_v25  ;;  %v820_v5 = vrot.slane %v2207_v55, 4 }
  0xed   : > { %v557_v6 = vpack.i.b16 %v556_v63, %v555_v60  ;;  %v677_v7 = vsel %vm572_vm1, 0, %v676_v56  ;;  %v902_v8 = vsel %vm572_vm1, %v901_v57, %v651_v47  ;;  %v567_v9 = vpack.i.b16 %v482_v2, %v2153_v46 }
  0xee   : > { %v687_v44 = vsel %vm572_vm1, %v686_v1, %v537_v3  ;;  %v569_v10 = vshrl.u32 %v482_v2, 16  ;;  %v906_v12 = vperm.slane %v902_v8, %v2110_v45  ;;  %v900_v15 = vperm.slane %v896_v4, %v2110_v45 }
  0xef   : > { %v691_v13 = vperm.slane %v687_v44, %v2110_v45  ;;  %v714_v14 = vrot.slane %v557_v6, 4  ;;  %v915_v19 = vsel %vm572_vm1, %v678_v54, %v671_v43  ;;  %v745_v21 = vperm.slane %v567_v9, %v2110_v45 }
  0xf0   : > { %v570_v60 = vpack.i.b16 %v569_v10, %v568_v61  ;;  %v907_v23 = vrot.slane %v906_v12, 4  ;;  %v921_v3 = vsel %vm572_vm1, %v920_v0, %v677_v7  ;;  %v919_v34 = vperm.slane %v915_v19, %v2110_v45 }
  0xf1   : > { %v692_v25 = vrot.slane %v691_v13, 4  ;;  %v695_v26 = vsel %vm572_vm1, %v691_v13, %v694_v37  ;;  %v715_v27 = vsel %vm572_vm1, %v714_v14, %v541_v51  ;;  %v746_v46 = vrot.slane %v745_v21, 4 }
  0xf2   : > { %v703_v35 = vperm.slane %v695_v26, %v2138_v28  ;;  %v719_v36 = vperm.slane %v715_v27, %v2110_v45  ;;  %v749_v61 = vsel %vm572_vm1, %v745_v21, %v748_v33  ;;  %v771_v37 = vperm.slane %v570_v60, %v2110_v45 }
  0xf3   : > { %v693_v39 = vsel %vm572_vm1, %v692_v25, %v2131_v22  ;;  %v757_v11 = vperm.slane %v749_v61, %v2138_v28  ;;  %v925_v41 = vperm.slane %v921_v3, %v2110_v45  ;;  %v747_v33 = vsel %vm572_vm1, %v746_v46, %v2128_v20 }
  0xf4   : > { %v699_v42 = vperm.slane %v693_v39, %v2138_v28  ;;  %v706_v48 = vrot.slane %v703_v35, 4  ;;  %v720_v16 = vrot.slane %v719_v36, 4  ;;  %v723_v30 = vsel %vm572_vm1, %v719_v36, %v722_v53 }
  0xf5   : > { %v731_v51 = vperm.slane %v723_v30, %v2138_v28  ;;  %v760_v22 = vrot.slane %v757_v11, 4  ;;  %v772_v43 = vrot.slane %v771_v37, 4  ;;  %v908_v57 = vsel %vm572_vm1, %v907_v23, %v900_v15 }
  0xf6   : > { %v704_v54 = vrot.slane %v699_v42, 4  ;;  %v707_v18 = vsel %vm572_vm1, 0, %v706_v48  ;;  %v721_v47 = vsel %vm572_vm1, %v720_v16, %v2144_v32  ;;  %v842_v53 = vsel %vm572_vm1, %v706_v48, %v699_v42 }
  0xf7   : > { %v727_v58 = vperm.slane %v721_v47, %v2138_v28  ;;  %v734_v56 = vrot.slane %v731_v51, 4  ;;  %v753_v62 = vperm.slane %v747_v33, %v2138_v28  ;;  %v847_v63 = vrot.slane %v707_v18, 4 }
  0xf8   : > { %v761_v20 = vsel %vm572_vm1, 0, %v760_v22  ;;  %v773_v0 = vsel %vm572_vm1, %v772_v43, %v2135_v24  ;;  %v775_v1 = vsel %vm572_vm1, %v771_v37, %v774_v38  ;;  %v2265_v6 = vperm.slane %v908_v57, %v2138_v28 }
  0xf9   : > { %v735_v32 = vsel %vm572_vm1, 0, %v734_v56  ;;  %v758_v2 = vrot.slane %v753_v62, 4  ;;  %v779_v4 = vperm.slane %v773_v0, %v2138_v28  ;;  %v732_v7 = vrot.slane %v727_v58, 4 }
  0xfa   : > { %v783_v8 = vperm.slane %v775_v1, %v2138_v28  ;;  %v934_v44 = vsel %vm572_vm1, %v760_v22, %v753_v62  ;;  %v939_v9 = vrot.slane %v761_v20, 4  ;;  %v874_v10 = vrot.slane %v735_v32, 4 }
  0xfb   : > { %v759_v12 = vsel %vm572_vm1, 0, %v758_v2  ;;  %v784_v24 = vrot.slane %v779_v4, 4  ;;  %v926_v13 = vrot.slane %v925_v41, 4  ;;  %v938_v14 = vperm.slane %v934_v44, %v2110_v45 }
  0xfc   : > { %v786_v38 = vrot.slane %v783_v8, 4  ;;  %v940_v15 = vsel %vm572_vm1, %v939_v9, %v759_v12  ;;  %v597_v19 = vsel %vm572_vm1, 0, %v596_v52  ;;  %v625_v3 = vsel %vm572_vm1, 0, %v624_v59 }
  0xfd   : > { %v785_v60 = vsel %vm572_vm1, 0, %v784_v24  ;;  %v927_v21 = vsel %vm572_vm1, %v926_v13, %v919_v34  ;;  %v944_v23 = vperm.slane %v940_v15, %v2110_v45  ;;  %v705_v35 = vsel %vm572_vm1, 0, %v704_v54 }
  0xfe   : > { %v787_v25 = vsel %vm572_vm1, 0, %v786_v38  ;;  %v2283_v26 = vperm.slane %v927_v21, %v2138_v28  ;;  %v953_v27 = vsel %vm572_vm1, %v786_v38, %v779_v4  ;;  %v733_v46 = vsel %vm572_vm1, 0, %v732_v7 }
  0xff   : > { %v958_v52 = vrot.slane %v787_v25, 4  ;;  %v945_v36 = vrot.slane %v944_v23, 4  ;;  %v788_v34 = vsel %vm572_vm1, %v2184_v40, %v2182_v29  ;;  %v957_v61 = vperm.slane %v953_v27, %v2110_v45 }
 0x100   : > { %v792_v59 = vperm.slane %v788_v34, %v2110_v45  ;;  %v794_v39 = vsel %vm572_vm1, %v793_v17, %v597_v19  ;;  %v815_v11 = vsel %vm572_vm1, %v2200_v50, %v2198_v49  ;;  %v998_v31 = vpack.i.b16 %v2283_v26, %v2265_v6 }
 0x101   : > { %v946_v37 = vsel %vm572_vm1, %v945_v36, %v938_v14  ;;  %v959_v41 = vsel %vm572_vm1, %v958_v52, %v785_v60  ;;  %v798_v42 = vperm.slane %v794_v39, %v2110_v45  ;;  %v819_v29 = vperm.slane %v815_v11, %v2110_v45 }
 0x102   : > { %v2304_v40 = vperm.slane %v946_v37, %v2138_v28  ;;  %v963_v48 = vperm.slane %v959_v41, %v2110_v45  ;;  %v801_v17 = vrot.slane %v792_v59, 4  ;;  %v821_v49 = vsel %vm572_vm1, %v820_v5, %v625_v3 }
 0x103   : > { %v828_v50 = vrot.slane %v819_v29, 4  ;;  %v846_v16 = vperm.slane %v842_v53, %v2110_v45  ;;  %v848_v30 = vsel %vm572_vm1, %v847_v63, %v705_v35  ;;  %v825_v22 = vperm.slane %v821_v49, %v2110_v45 }
 0x104   : > { %v964_v51 = vrot.slane %v963_v48, 4  ;;  %v802_v33 = vsel %vm572_vm1, %v798_v42, %v801_v17  ;;  %v852_v43 = vperm.slane %v848_v30, %v2110_v45  ;;  %v869_v47 = vsel %vm572_vm1, %v734_v56, %v727_v58 }
 0x105   : > { %v810_v54 = vperm.slane %v802_v33, %v2138_v28  ;;  %v855_v18 = vrot.slane %v846_v16, 4  ;;  %v875_v55 = vsel %vm572_vm1, %v874_v10, %v733_v46  ;;  %v829_v57 = vsel %vm572_vm1, %v825_v22, %v828_v50 }
 0x106   : > { %v965_v5 = vsel %vm572_vm1, %v964_v51, %v957_v61  ;;  %v873_v53 = vperm.slane %v869_v47, %v2110_v45  ;;  %v879_v62 = vperm.slane %v875_v55, %v2110_v45  ;;  %v837_v20 = vperm.slane %v829_v57, %v2138_v28 }
 0x107   : > { %v2325_v63 = vperm.slane %v965_v5, %v2138_v28  ;;  %v856_v0 = vsel %vm572_vm1, %v852_v43, %v855_v18  ;;  %v987_v1 = vshrl.u32 %v810_v54, 16  ;;  %v799_v32 = vrot.slane %v798_v42, 4 }
 0x108   : > { %v864_v58 = vperm.slane %v856_v0, %v2138_v28  ;;  %v882_v56 = vrot.slane %v873_v53, 4  ;;  %v826_v2 = vrot.slane %v825_v22, 4  ;;  %v988_v7 = vshrl.u32 %v837_v20, 16 }
 0x109   : > { %v1034_v4 = vpack.i.b16 %v2325_v63, %v2304_v40  ;;  %v853_v8 = vrot.slane %v852_v43, 4  ;;  %v880_v44 = vrot.slane %v879_v62, 4  ;;  %v1082_v9 = vunpack.c.l.b16 %v998_v31 }
 0x10a   : > { %v883_v10 = vsel %vm572_vm1, %v879_v62, %v882_v56  ;;  %v800_v12 = vsel %vm572_vm1, %v799_v32, %v792_v59  ;;  %v827_v24 = vsel %vm572_vm1, %v826_v2, %v819_v29  ;;  %v989_v14 = vpack.i.b16 %v988_v7, %v987_v1 }
 0x10b   : > { %v1083_v13 = vunpack.c.l.b16 %v1034_v4  ;;  %v891_v38 = vperm.slane %v883_v10, %v2138_v28  ;;  %v2337_v15 = vperm.slane %v800_v12, %v2138_v28  ;;  %v2340_v19 = vperm.slane %v827_v24, %v2138_v28 }
 0x10c   : > { %v854_v60 = vsel %vm572_vm1, %v853_v8, %v846_v16  ;;  %v881_v21 = vsel %vm572_vm1, %v880_v44, %v873_v53  ;;  %v986_v23 = vpack.i.b16 %v837_v20, %v810_v54  ;;  %v1023_v25 = vshrl.u32 %v864_v58, 16 }
 0x10d   : > { %v1084_v3 = vpack.c.b16 %v1083_v13, %v1082_v9  ;;  %v1024_v27 = vshrl.u32 %v891_v38, 16  ;;  %v2345_v35 = vperm.slane %v854_v60, %v2138_v28  ;;  %v2348_v52 = vperm.slane %v881_v21, %v2138_v28 }
 0x10e   : > { %v975_v36 = vshrl.u32 %v2337_v15, 16  ;;  %v976_v46 = vshrl.u32 %v2340_v19, 16  ;;  %v1022_v34 = vpack.i.b16 %v891_v38, %v864_v58  ;;  %v1067_v59 = vunpack.c.l.b16 %v989_v14 }
 0x10f   : > { %1085 = vrot.lane.b32.xlu1 %v1084_v3, %s1981_s22  ;;  %v1025_v61 = vpack.i.b16 %v1024_v27, %v1023_v25  ;;  %v1011_v39 = vshrl.u32 %v2345_v35, 16  ;;  %v813_v11 = vrot.slane %v810_v54, 4  ;;  %v1012_v41 = vshrl.u32 %v2348_v52, 16 }
 0x110   : > { %v977_v37 = vpack.i.b16 %v976_v46, %v975_v36  ;;  %v1062_v42 = vunpack.c.l.b16 %v986_v23  ;;  %v840_v29 = vrot.slane %v837_v20, 4  ;;  %v1063_v31 = vunpack.c.l.b16 %v1022_v34 }
 0x111   : > { %v1068_v48 = vunpack.c.l.b16 %v1025_v61  ;;  %v867_v17 = vrot.slane %v864_v58, 4  ;;  %v894_v49 = vrot.slane %v891_v38, 4  ;;  %v1013_v50 = vpack.i.b16 %v1012_v41, %v1011_v39 }
 0x112   : > { %v1047_v16 = vunpack.c.l.b16 %v977_v37  ;;  %v2356_v30 = vsel %vm572_vm1, 0, %v813_v11  ;;  %v841_v51 = vsel %vm572_vm1, 0, %v840_v29  ;;  %v811_v55 = vrot.slane %v2337_v15, 4 }
 0x113   : > { %v1069_v33 = vpack.c.b16 %v1068_v48, %v1067_v59  ;;  %v868_v22 = vsel %vm572_vm1, 0, %v867_v17  ;;  %v895_v43 = vsel %vm572_vm1, 0, %v894_v49  ;;  %v992_v54 = vpack.i.b16 %v841_v51, %v2356_v30 }
 0x114   : > { %v1048_v18 = vunpack.c.l.b16 %v1013_v50  ;;  %v1028_v47 = vpack.i.b16 %v895_v43, %v868_v22  ;;  %v838_v5 = vrot.slane %v2340_v19, 4  ;;  %v1064_v57 = vpack.c.b16 %v1063_v31, %v1062_v42 }
 0x115   : > { %1070 = vrot.lane.b32.xlu2 %v1069_v33, %s1982_s25  ;;  %v865_v53 = vrot.slane %v2345_v35, 4  ;;  %v892_v62 = vrot.slane %v2348_v52, 4  ;;  %v812_v0 = vsel %vm572_vm1, 0, %v811_v55  ;;  %v1072_v4 = vunpack.c.l.b16 %v992_v54 }
 0x116   : > { %v1049_v20 = vpack.c.b16 %v1048_v18, %v1047_v16  ;;  %v839_v1 = vsel %vm572_vm1, 0, %v838_v5  ;;  %v1073_v58 = vunpack.c.l.b16 %v1028_v47  ;;  %v981_v8 = vshrl.u32 %v812_v0, 16 }
 0x117   : > { %1065 = vrot.lane.b32.xlu1 %v1064_v57, %s1983_s26  ;;  %v866_v56 = vsel %vm572_vm1, 0, %v865_v53  ;;  %v893_v32 = vsel %vm572_vm1, 0, %v892_v62  ;;  %v980_v2 = vpack.i.b16 %v839_v1, %v812_v0  ;;  %v982_v44 = vshrl.u32 %v839_v1, 16 }
 0x118   : > { %1050 = vrot.lane.b32.xlu0 %v1049_v20, %s1984_s27  ;;  %v1016_v7 = vpack.i.b16 %v893_v32, %v866_v56  ;;  %v1017_v9 = vshrl.u32 %v866_v56, 16  ;;  %v1018_v10 = vshrl.u32 %v893_v32, 16  ;;  %v999_v12 = vshrl.u32 %v2265_v6, 16 }
 0x119   : > { %v1000_v24 = vshrl.u32 %v2283_v26, 16  ;;  %v983_v38 = vpack.i.b16 %v982_v44, %v981_v8  ;;  %v1035_v14 = vshrl.u32 %v2304_v40, 16  ;;  %v1036_v60 = vshrl.u32 %v2325_v63, 16 }
 0x11a   : > { %v1053_v13 = vunpack.c.l.b16 %v1016_v7  ;;  %v1074_v21 = vpack.c.b16 %v1073_v58, %v1072_v4  ;;  %v1052_v23 = vunpack.c.l.b16 %v980_v2  ;;  %v1019_v3 = vpack.i.b16 %v1018_v10, %v1017_v9 }
 0x11b   : > { %v993_v25 = vshrl.u32 %v2356_v30, 16  ;;  %v1037_v27 = vpack.i.b16 %v1036_v60, %v1035_v14  ;;  %v994_v36 = vshrl.u32 %v841_v51, 16  ;;  %v1029_v46 = vshrl.u32 %v868_v22, 16 }
 0x11c   : > { %v1030_v34 = vshrl.u32 %v895_v43, 16  ;;  %v1057_v61 = vunpack.c.l.b16 %v983_v38  ;;  %v1058_v59 = vunpack.c.l.b16 %v1019_v3  ;;  %v1001_v39 = vpack.i.b16 %v1000_v24, %v999_v12 }
 0x11d   : > { %1075 = vrot.lane.b32.xlu2 %v1074_v21, %s1985_s28  ;;  %v913_v11 = vrot.slane %v2265_v6, 4  ;;  %v1054_v37 = vpack.c.b16 %v1053_v13, %v1052_v23  ;;  %v932_v42 = vrot.slane %v2283_v26, 4  ;;  %v951_v29 = vrot.slane %v2304_v40, 4 }
 0x11e   : > { %v1031_v41 = vpack.i.b16 %v1030_v34, %v1029_v46  ;;  %v1059_v48 = vpack.c.b16 %v1058_v59, %v1057_v61  ;;  %v1088_v31 = vunpack.c.l.b16 %v1037_v27  ;;  %v970_v49 = vrot.slane %v2325_v63, 4 }
 0x11f   : > { %v914_v17 = vsel %vm572_vm1, 0, %v913_v11  ;;  %v995_v50 = vpack.i.b16 %v994_v36, %v993_v25  ;;  %v933_v16 = vsel %vm572_vm1, 0, %v932_v42  ;;  %v952_v6 = vsel %vm572_vm1, 0, %v951_v29 }
 0x120   : > { %1055 = vrot.lane.b32.xlu0 %v1054_v37, %s1986_s29  ;;  %1060 = vrot.lane.b32.xlu1 %v1059_v48, %s1987_s30  ;;  %v1087_v26 = vunpack.c.l.b16 %v1001_v39  ;;  %v971_v40 = vsel %vm572_vm1, 0, %v970_v49  ;;  %v1005_v30 = vshrl.u32 %v914_v17, 16  ;;  %v1006_v51 = vshrl.u32 %v933_v16, 16 }
 0x121   : > { %v1078_v33 = vunpack.c.l.b16 %v1031_v41  ;;  %v1041_v22 = vshrl.u32 %v952_v6, 16  ;;  %v1042_v43 = vshrl.u32 %v971_v40, 16  ;;  %v974_v18 = vpack.i.b16 %v2340_v19, %v2337_v15 }
 0x122   : > { %v1089_v63 = vpack.c.b16 %v1088_v31, %v1087_v26  ;;  %v1007_v54 = vpack.i.b16 %v1006_v51, %v1005_v30  ;;  %v1010_v47 = vpack.i.b16 %v2348_v52, %v2345_v35  ;;  %v1077_v55 = vunpack.c.l.b16 %v995_v50 }
 0x123   : > { %v1043_v5 = vpack.i.b16 %v1042_v43, %v1041_v22  ;;  %v1044_v57 = vunpack.c.l.b16 %v974_v18  ;;  %v1040_v1 = vpack.i.b16 %v971_v40, %v952_v6  ;;  %v1004_v15 = vpack.i.b16 %v933_v16, %v914_v17  ;;  %v260_v16 = vld [vmem:[%s242_s11] sm:$0xf] }
 0x124   : > { %v1045_v53 = vunpack.c.l.b16 %v1010_v47  ;;  %v1079_v62 = vpack.c.b16 %v1078_v33, %v1077_v55  ;;  %v1097_v20 = vunpack.c.l.b16 %v1007_v54  ;;  %v1992_v32 = vmov 0.0  }
 0x125   : > { %1090 = vrot.lane.b32.xlu2 %v1089_v63, %s1988_s4  ;;  %v1098_v0 = vunpack.c.l.b16 %v1043_v5  ;;  %v1093_v19 = vunpack.c.l.b16 %v1040_v1  ;;  %v1092_v35 = vunpack.c.l.b16 %v1004_v15  ;;  %v1141_v2 = vperm.slane %v1992_v32, %v2110_v45 }
 0x126   : > { %v1046_v58 = vpack.c.b16 %v1045_v53, %v1044_v57 }
 0x127   : > { %v1099_v56 = vpack.c.b16 %v1098_v0, %v1097_v20  ;;  %v1094_v52 = vpack.c.b16 %v1093_v19, %v1092_v35  ;;  %v1142_v4 = vrot.slane %v1141_v2, 4 }
 0x128   : > { %1080 = vrot.lane.b32.xlu0 %v1079_v62, %s1989_s5 }
 0x129   : > { %1100 = vrot.lane.b32.xlu1 %v1099_v56, %s1990_s6  ;;  %v1144_v7 = vsel %vm572_vm1, %v1141_v2, %v1142_v4  ;;  %v1143_v12 = vsel %vm572_vm1, %v1142_v4, %v1141_v2 }
 0x12a   : > { %v1152_v8 = vperm.slane %v1144_v7, %v2138_v28  ;;  %v1148_v24 = vperm.slane %v1143_v12, %v2138_v28 }
 0x12c   : > { %v1156_v44 = vrot.slane %v1152_v8, 4  ;;  %v1153_v13 = vrot.slane %v1148_v24, 4 }
 0x12e   : > { %v1157_v9 = vsel %vm572_vm1, %v1156_v44, %v1152_v8  ;;  %v1158_v10 = vsel %vm572_vm1, %v1152_v8, %v1156_v44  ;;  %v1155_v14 = vsel %vm572_vm1, %v1148_v24, %v1153_v13  ;;  %v1154_v60 = vsel %vm572_vm1, %v1153_v13, %v1148_v24 }
 0x12f   : > { %1160 = vrot.lane.b32.xlu2 %v1155_v14, %s1984_s27 }
 0x130   : > { %1095 = vrot.lane.b32.xlu0 %v1094_v52, %s1991_s7 }
 0x131   : > { %1168 = vrot.lane.b32.xlu1 %v1158_v10, %s1987_s30 }
 0x137   : > { %1172 = vrot.lane.b32.xlu2 %v1992_v32, %s1983_s26 }
 0x138   : > { %1164 = vrot.lane.b32.xlu0 %v1157_v9, %s1986_s29 }
 0x139   : > { %1178 = vrot.lane.b32.xlu1 %v1992_v32, %s1985_s28 }
 0x13f   : > { %1181 = vrot.lane.b32.xlu2 %v1992_v32, %s1989_s5 }
 0x140   : > { %1175 = vrot.lane.b32.xlu0 %v1992_v32, %s1982_s25 }
 0x141   : > { %1188 = vrot.lane.b32.xlu1 %v1155_v14, %s1988_s4 }
 0x147   : > { %1191 = vrot.lane.b32.xlu2 %v1157_v9, %s1991_s7 }
 0x148   : > { %1185 = vrot.lane.b32.xlu0 %v1154_v60, %s1981_s22 }
 0x150   : > { %1194 = vrot.lane.b32.xlu0 %v1158_v10, %s1990_s6 }
 0x16f   : > { %v1071_v3 = vpop.permute.xlu2 %1070 }
 0x177   : > { %v1076_v39 = vpop.permute.xlu2 %1075 }
 0x17f   : > { %v1091_v29 = vpop.permute.xlu2 %1090 }
 0x181   : > { %v1086_v38 = vpop.permute.xlu1 %1085 }
 0x189   : > { %v1066_v21 = vpop.permute.xlu1 %1065  ;;  %v1161_v6 = vpop.permute.xlu2 %1160 }
 0x18a   : > { %v1051_v23 = vpop.permute.xlu0 %1050  ;;  %v1197_v40 = vsel %vm1102_vm2, %v1154_v60, %v1161_v6 }
 0x18b   : > { %v1105_v25 = vsel %vm1102_vm2, %v1046_v58, %v1051_v23 }
 0x191   : > { %v1173_v33 = vpop.permute.xlu2 %1172 }
 0x192   : > { %v1056_v27 = vpop.permute.xlu0 %1055  ;;  %v1061_v46 = vpop.permute.xlu1 %1060 }
 0x193   : > { %v1107_v36 = vsel %vm353_vm0, %v1105_v25, %v1056_v27 }
 0x194   : > { %v1110_v34 = vsel %vm1108_vm3, %v1107_v36, %v1061_v46 }
 0x195   : > { %v1113_v61 = vsel %vm1111_vm4, %v1110_v34, %v1066_v21 }
 0x196   : > { %v1116_v59 = vsel %vm1114_vm5, %v1113_v61, %v1071_v3 }
 0x197   : > { %v1119_v11 = vsel %vm1117_vm6, %v1116_v59, %v1076_v39 }
 0x199   : > { %v1182_v47 = vpop.permute.xlu2 %1181 }
 0x19a   : > { %v1081_v37 = vpop.permute.xlu0 %1080 }
 0x19b   : > { %v1122_v41 = vsel %vm1120_vm7, %v1119_v11, %v1081_v37  ;;  %v1101_v17 = vpop.permute.xlu1 %1100 }
 0x19c   : > { %v1125_v42 = vsel %vm1123_vm8, %v1122_v41, %v1086_v38 }
 0x19d   : > { %v1128_v48 = vsel %vm1126_vm9, %v1125_v42, %v1091_v29 }
 0x1a1   : > { %v1192_v0 = vpop.permute.xlu2 %1191 }
 0x1a2   : > { %v1096_v31 = vpop.permute.xlu0 %1095 }
 0x1a3   : > { %v1131_v49 = vsel %vm1129_vm10, %v1128_v48, %v1096_v31  ;;  %v1169_v30 = vpop.permute.xlu1 %1168 }
 0x1a4   : > { %v1134_v50 = vsel %vm1132_vm11, %v1131_v49, %v1101_v17 }
 0x1a5   : > { %1218 = vmatpush.bf16.msra.mxu1 %v1134_v50 }
 0x1a8   : > { %1797 = vmatmul.msk.bf16.vlgmr.msra.gmra.mxu1 %vm353_vm0, %v260_v16 }
 0x1aa   : > { %v1165_v26 = vpop.permute.xlu0 %1164 }
 0x1ab   : > { %v1198_v51 = vsel %vm353_vm0, %v1197_v40, %v1165_v26  ;;  %v1179_v54 = vpop.permute.xlu1 %1178 }
 0x1ac   : > { %v1199_v22 = vsel %vm1108_vm3, %v1198_v51, %v1169_v30 }
 0x1ad   : > { %v1200_v63 = vsel %vm1111_vm4, %v1199_v22, %v1173_v33 }
 0x1b2   : > { %v1176_v43 = vpop.permute.xlu0 %1175 }
 0x1b3   : > { %v1201_v18 = vsel %vm1114_vm5, %v1200_v63, %v1176_v43  ;;  %v1189_v62 = vpop.permute.xlu1 %1188 }
 0x1b4   : > { %v1202_v55 = vsel %vm1117_vm6, %v1201_v18, %v1179_v54 }
 0x1b5   : > { %v1203_v57 = vsel %vm1120_vm7, %v1202_v55, %v1182_v47 }
 0x1ba   : > { %v1186_v5 = vpop.permute.xlu0 %1185 }
 0x1bb   : > { %v1204_v53 = vsel %vm1123_vm8, %v1203_v57, %v1186_v5 }
 0x1bc   : > { %v1205_v20 = vsel %vm1126_vm9, %v1204_v53, %v1189_v62 }
 0x1bd   : > { %v1206_v1 = vsel %vm1129_vm10, %v1205_v20, %v1192_v0 }
 0x1c2   : > { %v1195_v58 = vpop.permute.xlu0 %1194 }
 0x1c3   : > { %v1207_v56 = vsel %vm1132_vm11, %v1206_v1, %v1195_v58 }
 0x225   : > { %v1220_v15 = vpop.f32.mrf.mxu1 }
 0x226   : > { %v1221_v19 = vadd.f32 %v1220_v15, %v1207_v56 }
 0x228   : > { %1231 = vrot.lane.b32.xlu0 %v1221_v19, %s1993_s12  ;;  %1228 = vrot.lane.b32.xlu2 %v1221_v19, %s1994_s18  ;;  %v1260_v9 = vrot.slane %v1221_v19, 4 }
 0x229   : > { %1225 = vrot.lane.b32.xlu1 %v1221_v19, %s1995_s20 }
 0x22d   : > { %v1222_v35 = vpop.f32.mrf.mxu1 }
 0x230   : > { %1240 = vrot.lane.b32.xlu0 %v1221_v19, %s1991_s7  ;;  %1237 = vrot.lane.b32.xlu2 %v1221_v19, %s1990_s6 }
 0x231   : > { %1234 = vrot.lane.b32.xlu1 %v1221_v19, %s1996_s21 }
 0x238   : > { %1252 = vrot.lane.b32.xlu0 %v1221_v19, %s1985_s28  ;;  %1246 = vrot.lane.b32.xlu2 %v1221_v19, %s1981_s22 }
 0x239   : > { %1243 = vrot.lane.b32.xlu1 %v1221_v19, %s1988_s4 }
 0x240   : > { %1255 = vrot.lane.b32.xlu2 %v1221_v19, %s1982_s25  ;;  %s2542_s25 = scalar_lea.vmem %s2640_s3, %s1819_s24 }
 0x241   : > { %1249 = vrot.lane.b32.xlu1 %v1221_v19, %s1989_s5 }
 0x282   : > { %v1229_v52 = vpop.permute.xlu2 %1228 }
 0x283   : > { %v1258_v2 = vrot.slane %v1229_v52, 4  ;;  %v1261_v24 = vsel %vm572_vm1, %v1229_v52, %v1260_v9 }
 0x284   : > { %v1269_v21 = vperm.slane %v1261_v24, %v2110_v45 }
 0x285   : > { %v1259_v10 = vsel %vm572_vm1, %v1258_v2, %v1221_v19 }
 0x286   : > { %v1265_v38 = vperm.slane %v1259_v10, %v2110_v45  ;;  %v1320_v61 = vrot.slane %v1269_v21, 4 }
 0x288   : > { %v1308_v46 = vrot.slane %v1265_v38, 4 }
 0x28a   : > { %v1238_v32 = vpop.permute.xlu2 %1237 }
 0x28b   : > { %v1296_v48 = vrot.slane %v1238_v32, 4 }
 0x292   : > { %v1247_v14 = vpop.permute.xlu2 %1246 }
 0x293   : > { %v1372_v54 = vrot.slane %v1247_v14, 4 }
 0x29a   : > { %v1232_v4 = vpop.permute.xlu0 %1231  ;;  %v2467_v50 = vpop.permute.xlu2 %1255 }
 0x29b   : > { %v1270_v7 = vrot.slane %v1232_v4, 4  ;;  %v1226_v8 = vpop.permute.xlu1 %1225  ;;  %v1382_v18 = vrot.slane %v2467_v50, 4 }
 0x29c   : > { %v1272_v44 = vrot.slane %v1226_v8, 4 }
 0x29d   : > { %v1271_v12 = vsel %vm572_vm1, %v1270_v7, %v1226_v8 }
 0x29e   : > { %v1273_v13 = vsel %vm572_vm1, %v1232_v4, %v1272_v44  ;;  %v1277_v60 = vperm.slane %v1271_v12, %v2110_v45 }
 0x29f   : > { %v1281_v23 = vperm.slane %v1273_v13, %v2110_v45 }
 0x2a0   : > { %v1306_v34 = vrot.slane %v1277_v60, 4  ;;  %v1309_v11 = vsel %vm572_vm1, %v1277_v60, %v1308_v46 }
 0x2a1   : > { %v1318_v59 = vrot.slane %v1281_v23, 4  ;;  %v1321_v37 = vsel %vm572_vm1, %v1281_v23, %v1320_v61  ;;  %v1317_v31 = vperm.slane %v1309_v11, %v2138_v28 }
 0x2a2   : > { %v1241_v3 = vpop.permute.xlu0 %1240  ;;  %v1307_v42 = vsel %vm572_vm1, %v1306_v34, %v1265_v38  ;;  %v1329_v16 = vperm.slane %v1321_v37, %v2138_v28 }
 0x2a3   : > { %v1235_v25 = vpop.permute.xlu1 %1234  ;;  %v1282_v27 = vrot.slane %v1241_v3, 4  ;;  %v1319_v17 = vsel %vm572_vm1, %v1318_v59, %v1269_v21  ;;  %v1313_v40 = vperm.slane %v1307_v42, %v2138_v28  ;;  %v1360_v47 = vrot.slane %v1317_v31, 4 }
 0x2a4   : > { %v1284_v36 = vrot.slane %v1235_v25, 4  ;;  %v1325_v22 = vperm.slane %v1319_v17, %v2138_v28  ;;  %v1368_v0 = vrot.slane %v1329_v16, 4 }
 0x2a5   : > { %v1283_v41 = vsel %vm572_vm1, %v1282_v27, %v1235_v25  ;;  %v1356_v20 = vrot.slane %v1313_v40, 4 }
 0x2a6   : > { %v1285_v39 = vsel %vm572_vm1, %v1241_v3, %v1284_v36  ;;  %v1289_v6 = vperm.slane %v1283_v41, %v2110_v45  ;;  %v1364_v56 = vrot.slane %v1325_v22, 4 }
 0x2a7   : > { %v1293_v29 = vperm.slane %v1285_v39, %v2110_v45 }
 0x2a8   : > { %v1332_v5 = vrot.slane %v1289_v6, 4 }
 0x2a9   : > { %v1344_v43 = vrot.slane %v1293_v29, 4 }
 0x2aa   : > { %v1253_v49 = vpop.permute.xlu0 %1252 }
 0x2ab   : > { %v1244_v26 = vpop.permute.xlu1 %1243  ;;  %v1370_v30 = vrot.slane %v1253_v49, 4  ;;  %v2487_v7 = vsel %vm572_vm1, %v1253_v49, %v1372_v54 }
 0x2ac   : > { %v1294_v51 = vrot.slane %v1244_v26, 4  ;;  %v1297_v33 = vsel %vm572_vm1, %v1244_v26, %v1296_v48 }
 0x2ad   : > { %v1305_v63 = vperm.slane %v1297_v33, %v2110_v45  ;;  %v1371_v1 = vsel %vm572_vm1, %v1370_v30, %v1247_v14 }
 0x2ae   : > { %v1295_v55 = vsel %vm572_vm1, %v1294_v51, %v1238_v32  ;;  %v2490_v8 = vperm.slane %v1371_v1, %v2110_v45 }
 0x2af   : > { %v1301_v57 = vperm.slane %v1295_v55, %v2110_v45  ;;  %v1342_v53 = vrot.slane %v1305_v63, 4  ;;  %v1345_v62 = vsel %vm572_vm1, %v1305_v63, %v1344_v43 }
 0x2b0   : > { %v1353_v58 = vperm.slane %v1345_v62, %v2138_v28 }
 0x2b1   : > { %v1330_v15 = vrot.slane %v1301_v57, 4  ;;  %v1333_v19 = vsel %vm572_vm1, %v1301_v57, %v1332_v5  ;;  %v1343_v35 = vsel %vm572_vm1, %v1342_v53, %v1293_v29 }
 0x2b2   : > { %v1341_v52 = vperm.slane %v1333_v19, %v2138_v28  ;;  %v1349_v32 = vperm.slane %v1343_v35, %v2138_v28  ;;  %v1366_v2 = vrot.slane %v1353_v58, 4  ;;  %v1369_v4 = vsel %vm572_vm1, %v1353_v58, %v1368_v0 }
 0x2b3   : > { %v1331_v44 = vsel %vm572_vm1, %v1330_v15, %v1289_v6  ;;  %v1462_v9 = vrot.slane %v1369_v4, 4  ;;  %v2493_v10 = vpop.permute.xlu1 %1249 }
 0x2b4   : > { %v1337_v12 = vperm.slane %v1331_v44, %v2138_v28  ;;  %v1358_v24 = vrot.slane %v1341_v52, 4  ;;  %v1361_v13 = vsel %vm572_vm1, %v1341_v52, %v1360_v47  ;;  %v1362_v38 = vrot.slane %v1349_v32, 4 }
 0x2b5   : > { %v1365_v14 = vsel %vm572_vm1, %v1349_v32, %v1364_v56  ;;  %v1367_v60 = vsel %vm572_vm1, %v1366_v2, %v1329_v16  ;;  %v1438_v21 = vrot.slane %v1361_v13, 4  ;;  %v2501_v23 = vsel %vm572_vm1, %v1382_v18, %v2493_v10 }
 0x2b6   : > { %v1354_v3 = vrot.slane %v1337_v12, 4  ;;  %v1357_v25 = vsel %vm572_vm1, %v1337_v12, %v1356_v20  ;;  %v1359_v27 = vsel %vm572_vm1, %v1358_v24, %v1317_v31  ;;  %v1363_v36 = vsel %vm572_vm1, %v1362_v38, %v1325_v22 }
 0x2b7   : > { %v1426_v46 = vrot.slane %v1359_v27, 4  ;;  %v1439_v34 = vsel %vm572_vm1, %v1438_v21, %v1357_v25  ;;  %v1440_v61 = vrot.slane %v1357_v25, 4  ;;  %v1450_v59 = vrot.slane %v1367_v60, 4 }
 0x2b8   : > { %v1355_v39 = vsel %vm572_vm1, %v1354_v3, %v1313_v40  ;;  %v1445_v11 = vperm.slane %v1439_v34, %v2110_v45  ;;  %v1452_v37 = vrot.slane %v1363_v36, 4  ;;  %v1463_v41 = vsel %vm572_vm1, %v1462_v9, %v1365_v14 }
 0x2b9   : > { %v1427_v42 = vsel %vm572_vm1, %v1426_v46, %v1355_v39  ;;  %v1428_v29 = vrot.slane %v1355_v39, 4  ;;  %v1441_v48 = vsel %vm572_vm1, %v1361_v13, %v1440_v61  ;;  %v1451_v31 = vsel %vm572_vm1, %v1450_v59, %v1363_v36 }
 0x2ba   : > { %v1433_v17 = vperm.slane %v1427_v42, %v2110_v45  ;;  %v1449_v49 = vperm.slane %v1441_v48, %v2110_v45  ;;  %v1453_v16 = vsel %vm572_vm1, %v1367_v60, %v1452_v37  ;;  %v1457_v6 = vperm.slane %v1451_v31, %v2110_v45 }
 0x2bb   : > { %v1429_v26 = vsel %vm572_vm1, %v1359_v27, %v1428_v29  ;;  %v1461_v40 = vperm.slane %v1453_v16, %v2110_v45  ;;  %v1464_v30 = vrot.slane %v1365_v14, 4  ;;  %v1469_v51 = vperm.slane %v1463_v41, %v2110_v45 }
 0x2bc   : > { %v1437_v33 = vperm.slane %v1429_v26, %v2110_v45  ;;  %v1474_v22 = vrot.slane %v1445_v11, 4  ;;  %v1476_v43 = vrot.slane %v1433_v17, 4  ;;  %v1486_v63 = vrot.slane %v1449_v49, 4 }
 0x2bd   : > { %v1465_v54 = vsel %vm572_vm1, %v1369_v4, %v1464_v30  ;;  %v1498_v18 = vrot.slane %v1469_v51, 4  ;;  %v1500_v47 = vrot.slane %v1457_v6, 4  ;;  %v1512_v55 = vrot.slane %v1461_v40, 4 }
 0x2be   : > { %v1473_v5 = vperm.slane %v1465_v54, %v2110_v45  ;;  %v1475_v57 = vsel %vm572_vm1, %v1474_v22, %v1433_v17  ;;  %v1477_v53 = vsel %vm572_vm1, %v1445_v11, %v1476_v43  ;;  %v1487_v62 = vsel %vm572_vm1, %v1486_v63, %v1437_v33 }
 0x2bf   : > { %v1481_v20 = vperm.slane %v1475_v57, %v2138_v28  ;;  %v1485_v0 = vperm.slane %v1477_v53, %v2138_v28  ;;  %v1488_v1 = vrot.slane %v1437_v33, 4  ;;  %v1493_v58 = vperm.slane %v1487_v62, %v2138_v28 }
 0x2c0   : > { %v1499_v56 = vsel %vm572_vm1, %v1498_v18, %v1457_v6  ;;  %v1501_v15 = vsel %vm572_vm1, %v1469_v51, %v1500_v47  ;;  %v1510_v19 = vrot.slane %v1473_v5, 4  ;;  %v1513_v35 = vsel %vm572_vm1, %v1473_v5, %v1512_v55 }
 0x2c1   : > { %v1489_v52 = vsel %vm572_vm1, %v1449_v49, %v1488_v1  ;;  %v1505_v32 = vperm.slane %v1499_v56, %v2138_v28  ;;  %v1509_v2 = vperm.slane %v1501_v15, %v2138_v28  ;;  %v1521_v4 = vperm.slane %v1513_v35, %v2138_v28 }
 0x2c2   : > { %v1497_v44 = vperm.slane %v1489_v52, %v2138_v28  ;;  %v1511_v9 = vsel %vm572_vm1, %v1510_v19, %v1461_v40  ;;  %v1524_v12 = vrot.slane %v1481_v20, 4  ;;  %v1528_v24 = vrot.slane %v1485_v0, 4 }
 0x2c3   : > { %v1517_v13 = vperm.slane %v1511_v9, %v2138_v28  ;;  %v1522_v38 = vrot.slane %v1505_v32, 4  ;;  %v1526_v14 = vrot.slane %v1509_v2, 4  ;;  %v1532_v60 = vrot.slane %v1493_v58, 4 }
 0x2c4   : > { %v1381_v21 = vperm.slane %v2487_v7, %v2110_v45  ;;  %v1525_v3 = vsel %vm572_vm1, %v1505_v32, %v1524_v12  ;;  %v1529_v25 = vsel %vm572_vm1, %v1509_v2, %v1528_v24  ;;  %v1534_v27 = vrot.slane %v1521_v4, 4 }
 0x2c5   : > { %v1523_v36 = vsel %vm572_vm1, %v1522_v38, %v1481_v20  ;;  %v1527_v46 = vsel %vm572_vm1, %v1526_v14, %v1485_v0  ;;  %v1530_v34 = vrot.slane %v1517_v13, 4  ;;  %v1536_v61 = vrot.slane %v1497_v44, 4  ;;  %1593 = vst.msk [vmem:[%s2542_s25 + $0x8] sm:$0xff] %vm1102_vm2, %v1525_v3 }
 0x2c6   : > { %v1396_v59 = vrot.slane %v2490_v8, 4  ;;  %1592 = vst.msk [vmem:[%s2542_s25] sm:$0xff] %vm1102_vm2, %v1523_v36  ;;  %v1384_v7 = vrot.slane %v2493_v10, 4  ;;  %v1389_v39 = vperm.slane %v2501_v23, %v2110_v45  ;;  %v1533_v37 = vsel %vm572_vm1, %v1517_v13, %v1532_v60 }
 0x2c7   : > { %v1531_v11 = vsel %vm572_vm1, %v1530_v34, %v1493_v58  ;;  %1594 = vst.msk [vmem:[%s2542_s25 + $0x10] sm:$0xff] %vm1102_vm2, %v1527_v46  ;;  %v1535_v41 = vsel %vm572_vm1, %v1534_v27, %v1497_v44  ;;  %v1408_v48 = vrot.slane %v1381_v21, 4  ;;  %v1537_v23 = vsel %vm572_vm1, %v1521_v4, %v1536_v61 }
 0x2c8   : > { %1595 = vst.msk [vmem:[%s2542_s25 + $0x18] sm:$0xff] %vm1102_vm2, %v1529_v25  ;;  %v1385_v42 = vsel %vm572_vm1, %v2467_v50, %v1384_v7  ;;  %v1394_v29 = vrot.slane %v1389_v39, 4  ;;  %v1397_v10 = vsel %vm572_vm1, %v1389_v39, %v1396_v59 }
 0x2c9   : > { %1596 = vst.msk [vmem:[%s2542_s25 + $0x20] sm:$0xff] %vm1102_vm2, %v1531_v11  ;;  %v1393_v31 = vperm.slane %v1385_v42, %v2110_v45  ;;  %v1405_v17 = vperm.slane %v1397_v10, %v2138_v28 }
 0x2ca   : > { %1597 = vst.msk [vmem:[%s2542_s25 + $0x28] sm:$0xff] %vm1102_vm2, %v1533_v37  ;;  %v1395_v49 = vsel %vm572_vm1, %v1394_v29, %v2490_v8 }
 0x2cb   : > { %1598 = vst.msk [vmem:[%s2542_s25 + $0x30] sm:$0xff] %vm1102_vm2, %v1535_v41  ;;  %v1401_v50 = vperm.slane %v1395_v49, %v2138_v28  ;;  %v1406_v16 = vrot.slane %v1393_v31, 4  ;;  %v1409_v6 = vsel %vm572_vm1, %v1393_v31, %v1408_v48  ;;  %v1420_v26 = vrot.slane %v1405_v17, 4 }
 0x2cc   : > { %1599 = vst.msk [vmem:[%s2542_s25 + $0x38] sm:$0xff] %vm1102_vm2, %v1537_v23  ;;  %v1417_v40 = vperm.slane %v1409_v6, %v2138_v28 }
 0x2cd   : > { %v1407_v30 = vsel %vm572_vm1, %v1406_v16, %v1381_v21  ;;  %v1418_v51 = vrot.slane %v1401_v50, 4  ;;  %v1421_v33 = vsel %vm572_vm1, 0.0, %v1420_v26  ;;  %v1538_v22 = vsel %vm572_vm1, %v1420_v26, %v1401_v50 }
 0x2ce   : > { %v1413_v8 = vperm.slane %v1407_v30, %v2138_v28  ;;  %v1424_v43 = vrot.slane %v1417_v40, 4  ;;  %v1542_v63 = vperm.slane %v1538_v22, %v2110_v45  ;;  %v1543_v54 = vrot.slane %v1421_v33, 4 }
 0x2cf   : > { %v1419_v18 = vsel %vm572_vm1, 0.0, %v1418_v51 }
 0x2d0   : > { %v1422_v47 = vrot.slane %v1413_v8, 4  ;;  %v1425_v55 = vsel %vm572_vm1, 0.0, %v1424_v43  ;;  %v1544_v5 = vsel %vm572_vm1, %v1543_v54, %v1419_v18  ;;  %v1549_v57 = vsel %vm572_vm1, %v1424_v43, %v1413_v8 }
 0x2d1   : > { %v1548_v53 = vperm.slane %v1544_v5, %v2110_v45  ;;  %v1553_v62 = vperm.slane %v1549_v57, %v2110_v45  ;;  %v1554_v20 = vrot.slane %v1425_v55, 4  ;;  %v1562_v0 = vrot.slane %v1542_v63, 4 }
 0x2d2   : > { %v1423_v1 = vsel %vm572_vm1, 0.0, %v1422_v47 }
 0x2d3   : > { %v1555_v58 = vsel %vm572_vm1, %v1554_v20, %v1423_v1  ;;  %v1560_v56 = vrot.slane %v1548_v53, 4  ;;  %v1563_v15 = vsel %vm572_vm1, %v1548_v53, %v1562_v0  ;;  %v1574_v19 = vrot.slane %v1553_v62, 4 }
 0x2d4   : > { %v1559_v35 = vperm.slane %v1555_v58, %v2110_v45  ;;  %v1571_v52 = vperm.slane %v1563_v15, %v2138_v28 }
 0x2d5   : > { %v1561_v32 = vsel %vm572_vm1, %v1560_v56, %v1542_v63 }
 0x2d6   : > { %v1567_v2 = vperm.slane %v1561_v32, %v2138_v28  ;;  %v1572_v4 = vrot.slane %v1559_v35, 4  ;;  %v1575_v44 = vsel %vm572_vm1, %v1559_v35, %v1574_v19  ;;  %v1590_v9 = vrot.slane %v1571_v52, 4 }
 0x2d7   : > { %v1583_v12 = vperm.slane %v1575_v44, %v2138_v28 }
 0x2d8   : > { %v1573_v24 = vsel %vm572_vm1, %v1572_v4, %v1553_v62  ;;  %v1586_v13 = vrot.slane %v1567_v2, 4 }
 0x2d9   : > { %v1579_v45 = vperm.slane %v1573_v24, %v2138_v28  ;;  %v1588_v38 = vrot.slane %v1583_v12, 4  ;;  %v1591_v14 = vsel %vm572_vm1, %v1583_v12, %v1590_v9 }
 0x2da   : > { %1603 = vst.msk [vmem:[%s2542_s25 + $0x58] sm:$0xff] %vm1102_vm2, %v1591_v14 }
 0x2db   : > { %v1584_v60 = vrot.slane %v1579_v45, 4  ;;  %v1587_v21 = vsel %vm572_vm1, %v1579_v45, %v1586_v13  ;;  %v1589_v3 = vsel %vm572_vm1, %v1588_v38, %v1571_v52 }
 0x2dc   : > { %1601 = vst.msk [vmem:[%s2542_s25 + $0x48] sm:$0xff] %vm1102_vm2, %v1587_v21 }
 0x2dd   : > { %v1585_v25 = vsel %vm572_vm1, %v1584_v60, %v1567_v2  ;;  %1602 = vst.msk [vmem:[%s2542_s25 + $0x50] sm:$0xff] %vm1102_vm2, %v1589_v3 }
 0x2de   : > { %1600 = vst.msk [vmem:[%s2542_s25 + $0x40] sm:$0xff] %vm1102_vm2, %v1585_v25 }
 0x2df PF: > { %s16_s17 = sadd.s32 1, %s1975_s17   ;;  %s2642_s12 = smov %s1959_s13 }
 0x2e0   : > { %p13_p0 = scmp.ge.s32.totalorder %s16_s17, 4   ;;  %s2643_s13 = smov %s1963_s14 }
 0x2e1   : > { %s2644_s14 = smov %s2062_s23  ;;  %s2645_s15 = smov %s1971_s16 }
 0x2e2   : > { %s2646_s16 = smov %s2648_s19  ;;  %15 = sbr.rel (!%p13_p0) target bundleno = 4 (0x4), region = 78 }
 0x2e7   :  { %1634 = vsyncpa [#allocation3], 1 }
 0x2e8   :  { %1636 = vsyncpa [#allocation3 + $0x1], 1 }

</bundles_post_ra>
